<compile_context>
chip_gen: v6e
topology: v6e:2x2x1
jax: 0.10.0
libtpu: 0.0.40
codegen_flags: <defaults>
</compile_context>

<pallas_src>
import functools

import jax
import jax.numpy as jnp
from jax.experimental import pallas as pl
from jax.experimental.pallas import tpu as pltpu

NEG_SLOPE = 0.01  # nn.LeakyReLU default negative_slope


def _round_up(x, m):
    return ((x + m - 1) // m) * m


# ----------------------------- Pallas kernel --------------------------------
def renderer_kernel(x_ref, a_ref, c_ref, vb_ref, wd_ref, bd_ref,
                    rec_ref, map_ref):
    # x_ref  : (Cin,  tile_p)  pixel tile, channel-major
    # a_ref  : (nf,   Cin)     folded encoder+mid weight  (Wm @ We)
    # c_ref  : (nf,   1)       folded bias                (Wm @ be + bm)
    # vb_ref : (nf,   1)       val * rowsum(Wm)
    # wd_ref : (Cout, nf)      decoder weight
    # bd_ref : (Cout, 1)       decoder bias
    # rec_ref / map_ref : (Cout, tile_p)
    x = x_ref[...]
    h_rec = jnp.dot(a_ref[...], x, preferred_element_type=jnp.float32) + c_ref[...]
    h_map = h_rec + vb_ref[...]                 # map branch reuses rec pre-activation
    h_rec = jnp.where(h_rec >= 0.0, h_rec, NEG_SLOPE * h_rec)   # LeakyReLU
    h_map = jnp.where(h_map >= 0.0, h_map, NEG_SLOPE * h_map)

    wd = wd_ref[...]
    bd = jnp.broadcast_to(bd_ref[...], rec_ref.shape)           # hoisted, used twice
    rec_ref[...] = jnp.dot(wd, h_rec, preferred_element_type=jnp.float32) + bd
    map_ref[...] = jnp.dot(wd, h_map, preferred_element_type=jnp.float32) + bd


# ------------------------------ wrapper --------------------------------------
@functools.partial(jax.jit, static_argnames=("max_tile_p",))
def renderer_forward(params, xs, vals, *, max_tile_p=4096):
    """params: tuple of 3 (We, be, Wm, bm, Wd, bd), PyTorch (out, in) layout.
       xs:     tuple of 3 NCHW inputs (x_ex, x_bc, x_vb).
       vals:   (3,) array (v_ex, v_bc, v_vb).
       Returns (rec_ex, rec_bc, rec_vb, map_ex, map_bc, map_vb), each NCHW."""
    n_ops = len(xs)
    N, Cin, H, W = xs[0].shape
    HW = H * W
    nf = params[0][2].shape[0]
    Cout = params[0][4].shape[0]

    tile_p = min(max_tile_p, _round_up(HW, 128))
    HWp = _round_up(HW, tile_p)

    # Fold encoder into mid conv (exact up to fp reassociation); stack per op.
    a_l, c_l, vb_l, wd_l, bd_l = [], [], [], [], []
    for i in range(n_ops):
        We, be, Wm, bm, Wd, bd = params[i]
        a_l.append(Wm @ We)                                      # (nf, Cin)
        c_l.append((Wm @ be + bm)[:, None])                      # (nf, 1)
        vb_l.append((vals[i] * jnp.sum(Wm, axis=1))[:, None])    # (nf, 1)
        wd_l.append(Wd)                                          # (Cout, nf)
        bd_l.append(bd[:, None])                                 # (Cout, 1)
    a_all = jnp.stack(a_l)
    c_all = jnp.stack(c_l)
    vb_all = jnp.stack(vb_l)
    wd_all = jnp.stack(wd_l)
    bd_all = jnp.stack(bd_l)

    # NCHW -> (op, N, Cin, H*W): pure reshape + stack, no transpose.
    x_all = jnp.stack([x.reshape(N, Cin, HW) for x in xs])
    if HWp != HW:
        x_all = jnp.pad(x_all, ((0, 0), (0, 0), (0, 0), (0, HWp - HW)))

    grid = (n_ops, N, HWp // tile_p)
    rec, mp = pl.pallas_call(
        renderer_kernel,
        grid=grid,
        in_specs=[
            pl.BlockSpec((None, None, Cin, tile_p), lambda o, n, t: (o, n, 0, t)),
            pl.BlockSpec((None, nf, Cin),   lambda o, n, t: (o, 0, 0)),
            pl.BlockSpec((None, nf, 1),     lambda o, n, t: (o, 0, 0)),
            pl.BlockSpec((None, nf, 1),     lambda o, n, t: (o, 0, 0)),
            pl.BlockSpec((None, Cout, nf),  lambda o, n, t: (o, 0, 0)),
            pl.BlockSpec((None, Cout, 1),   lambda o, n, t: (o, 0, 0)),
        ],
        out_specs=[
            pl.BlockSpec((None, None, Cout, tile_p), lambda o, n, t: (o, n, 0, t)),
            pl.BlockSpec((None, None, Cout, tile_p), lambda o, n, t: (o, n, 0, t)),
        ],
        out_shape=(
            jax.ShapeDtypeStruct((n_ops, N, Cout, HWp), jnp.float32),
            jax.ShapeDtypeStruct((n_ops, N, Cout, HWp), jnp.float32),
        ),
        compiler_params=pltpu.CompilerParams(
            dimension_semantics=("parallel", "parallel", "parallel")),
    )(x_all, a_all, c_all, vb_all, wd_all, bd_all)

    rec = rec[..., :HW].reshape(n_ops, N, Cout, H, W)
    mp = mp[..., :HW].reshape(n_ops, N, Cout, H, W)
    return rec[0], rec[1], rec[2], mp[0], mp[1], mp[2]


# ----------------------- pure-JAX reference (un-folded) ----------------------
def operator_ref(x, val, p):
    """Matches PyTorch Operator.forward exactly (1x1 convs + LeakyReLU)."""
    We, be, Wm, bm, Wd, bd = p
    xc = jnp.einsum("oc,nchw->nohw", We, x) + be[None, :, None, None]
    yc = xc + val
    h = jnp.einsum("of,nfhw->nohw", Wm, yc) + bm[None, :, None, None]
    h = jnp.where(h >= 0.0, h, NEG_SLOPE * h)
    return jnp.einsum("of,nfhw->nohw", Wd, h) + bd[None, :, None, None]


def init_operator_params(key, in_ch, out_ch, base_nf):
    ks = jax.random.split(key, 6)
    s = 0.1
    We = s * jax.random.normal(ks[0], (base_nf, in_ch), jnp.float32)
    be = s * jax.random.normal(ks[1], (base_nf,), jnp.float32)
    Wm = s * jax.random.normal(ks[2], (base_nf, base_nf), jnp.float32)
    bm = s * jax.random.normal(ks[3], (base_nf,), jnp.float32)
    Wd = s * jax.random.normal(ks[4], (out_ch, base_nf), jnp.float32)
    bd = s * jax.random.normal(ks[5], (out_ch,), jnp.float32)
    return (We, be, Wm, bm, Wd, bd)


if __name__ == "__main__":
    key = jax.random.PRNGKey(0)
    k_params, k_data = jax.random.split(key)
    in_channels, out_channels, base_nf = 3, 3, 64
    N, H, W = 2, 16, 16

    kp = jax.random.split(k_params, 3)
    params = tuple(init_operator_params(k, in_channels, out_channels, base_nf)
                   for k in kp)

    kd = jax.random.split(k_data, 3)
    xs = tuple(jax.random.uniform(k, (N, in_channels, H, W), jnp.float32)
               for k in kd)
    vals = jnp.array([0.25, -0.5, 0.75], jnp.float32)

    outs = jax.block_until_ready(renderer_forward(params, xs, vals))

    # correctness vs. pure-JAX reference of the original (un-folded) module
    ok = True
    for i in range(3):
        rec_r = operator_ref(xs[i], 0.0, params[i])
        map_r = operator_ref(xs[i], float(vals[i]), params[i])
        ok &= bool(jnp.allclose(outs[i], rec_r, atol=1e-4, rtol=1e-4))
        ok &= bool(jnp.allclose(outs[3 + i], map_r, atol=1e-4, rtol=1e-4))
        assert outs[i].shape == (N, out_channels, H, W)
        assert outs[3 + i].shape == (N, out_channels, H, W)
    assert ok, "mismatch vs reference"
    print("KERNEL_OK")
</pallas_src>

<mosaic_0001>
module attributes {stable_mosaic.version = 11 : i64} {
  func.func @renderer_kernel(%arg0: i32, %arg1: i32, %arg2: i32, %arg3: memref<1x1x3x256xf32, #tpu.memory_space<vmem>>, %arg4: memref<1x64x3xf32, #tpu.memory_space<vmem>>, %arg5: memref<1x64x1xf32, #tpu.memory_space<vmem>>, %arg6: memref<1x64x1xf32, #tpu.memory_space<vmem>>, %arg7: memref<1x3x64xf32, #tpu.memory_space<vmem>>, %arg8: memref<1x3x1xf32, #tpu.memory_space<vmem>>, %arg9: memref<1x1x3x256xf32, #tpu.memory_space<vmem>>, %arg10: memref<1x1x3x256xf32, #tpu.memory_space<vmem>>) attributes {dimension_semantics = [#tpu.dimension_semantics<parallel>, #tpu.dimension_semantics<parallel>, #tpu.dimension_semantics<parallel>], iteration_bounds = array<i64: 3, 2, 1>, scalar_prefetch = 0 : i64, scratch_operands = 0 : i64, tpu.core_type = #tpu.core_type<tc>, window_params = [{transform_indices = @transform_0, window_bounds = array<i64: 1, 1, 3, 256>}, {transform_indices = @transform_1, window_bounds = array<i64: 1, 64, 3>}, {transform_indices = @transform_2, window_bounds = array<i64: 1, 64, 1>}, {transform_indices = @transform_3, window_bounds = array<i64: 1, 64, 1>}, {transform_indices = @transform_4, window_bounds = array<i64: 1, 3, 64>}, {transform_indices = @transform_5, window_bounds = array<i64: 1, 3, 1>}, {transform_indices = @transform_6, window_bounds = array<i64: 1, 1, 3, 256>}, {transform_indices = @transform_7, window_bounds = array<i64: 1, 1, 3, 256>}]} {
    %c0 = arith.constant 0 : index
    %c0_0 = arith.constant 0 : index
    %c0_1 = arith.constant 0 : index
    %c0_2 = arith.constant 0 : index
    %0 = vector.load %arg3[%c0, %c0_0, %c0_1, %c0_2] : memref<1x1x3x256xf32, #tpu.memory_space<vmem>>, vector<1x1x3x256xf32>
    %1 = vector.shape_cast %0 : vector<1x1x3x256xf32> to vector<3x256xf32>
    %c0_3 = arith.constant 0 : index
    %c0_4 = arith.constant 0 : index
    %c0_5 = arith.constant 0 : index
    %2 = vector.load %arg4[%c0_3, %c0_4, %c0_5] : memref<1x64x3xf32, #tpu.memory_space<vmem>>, vector<1x64x3xf32>
    %3 = vector.shape_cast %2 : vector<1x64x3xf32> to vector<64x3xf32>
    %cst = arith.constant dense<0.000000e+00> : vector<64x256xf32>
    %4 = tpu.matmul %3, %1, %cst {dimension_numbers = #tpu.dot_dimension_numbers<[1], [0], [0], [1], [0, 0, 1, 1], [], []>} : vector<64x3xf32>, vector<3x256xf32>, vector<64x256xf32> -> vector<64x256xf32>
    %c0_6 = arith.constant 0 : index
    %c0_7 = arith.constant 0 : index
    %c0_8 = arith.constant 0 : index
    %5 = vector.load %arg5[%c0_6, %c0_7, %c0_8] : memref<1x64x1xf32, #tpu.memory_space<vmem>>, vector<1x64x1xf32>
    %6 = vector.shape_cast %5 : vector<1x64x1xf32> to vector<64x1xf32>
    %7 = vector.broadcast %6 : vector<64x1xf32> to vector<64x256xf32>
    %8 = arith.addf %4, %7 : vector<64x256xf32>
    %c0_9 = arith.constant 0 : index
    %c0_10 = arith.constant 0 : index
    %c0_11 = arith.constant 0 : index
    %9 = vector.load %arg6[%c0_9, %c0_10, %c0_11] : memref<1x64x1xf32, #tpu.memory_space<vmem>>, vector<1x64x1xf32>
    %10 = vector.shape_cast %9 : vector<1x64x1xf32> to vector<64x1xf32>
    %11 = vector.broadcast %10 : vector<64x1xf32> to vector<64x256xf32>
    %12 = arith.addf %8, %11 : vector<64x256xf32>
    %cst_12 = arith.constant 0.000000e+00 : f32
    %13 = vector.broadcast %cst_12 : f32 to vector<64x256xf32>
    %14 = arith.cmpf oge, %8, %13 : vector<64x256xf32>
    %cst_13 = arith.constant 0.00999999977 : f32
    %15 = vector.broadcast %cst_13 : f32 to vector<64x256xf32>
    %16 = arith.mulf %15, %8 : vector<64x256xf32>
    %17 = arith.select %14, %8, %16 : vector<64x256xi1>, vector<64x256xf32>
    %cst_14 = arith.constant 0.000000e+00 : f32
    %18 = vector.broadcast %cst_14 : f32 to vector<64x256xf32>
    %19 = arith.cmpf oge, %12, %18 : vector<64x256xf32>
    %cst_15 = arith.constant 0.00999999977 : f32
    %20 = vector.broadcast %cst_15 : f32 to vector<64x256xf32>
    %21 = arith.mulf %20, %12 : vector<64x256xf32>
    %22 = arith.select %19, %12, %21 : vector<64x256xi1>, vector<64x256xf32>
    %c0_16 = arith.constant 0 : index
    %c0_17 = arith.constant 0 : index
    %c0_18 = arith.constant 0 : index
    %23 = vector.load %arg7[%c0_16, %c0_17, %c0_18] : memref<1x3x64xf32, #tpu.memory_space<vmem>>, vector<1x3x64xf32>
    %24 = vector.shape_cast %23 : vector<1x3x64xf32> to vector<3x64xf32>
    %c0_19 = arith.constant 0 : index
    %c0_20 = arith.constant 0 : index
    %c0_21 = arith.constant 0 : index
    %25 = vector.load %arg8[%c0_19, %c0_20, %c0_21] : memref<1x3x1xf32, #tpu.memory_space<vmem>>, vector<1x3x1xf32>
    %26 = vector.shape_cast %25 : vector<1x3x1xf32> to vector<3x1xf32>
    %27 = vector.shape_cast %26 : vector<3x1xf32> to vector<3x1xf32>
    %28 = vector.broadcast %27 : vector<3x1xf32> to vector<3x256xf32>
    %cst_22 = arith.constant dense<0.000000e+00> : vector<3x256xf32>
    %29 = tpu.matmul %24, %17, %cst_22 {dimension_numbers = #tpu.dot_dimension_numbers<[1], [0], [0], [1], [0, 0, 1, 1], [], []>} : vector<3x64xf32>, vector<64x256xf32>, vector<3x256xf32> -> vector<3x256xf32>
    %30 = arith.addf %29, %28 : vector<3x256xf32>
    %c0_23 = arith.constant 0 : index
    %c0_24 = arith.constant 0 : index
    %c0_25 = arith.constant 0 : index
    %c0_26 = arith.constant 0 : index
    %31 = vector.load %arg9[%c0_23, %c0_24, %c0_25, %c0_26] : memref<1x1x3x256xf32, #tpu.memory_space<vmem>>, vector<1x1x3x256xf32>
    %32 = vector.shape_cast %31 : vector<1x1x3x256xf32> to vector<3x256xf32>
    %33 = vector.shape_cast %30 : vector<3x256xf32> to vector<1x1x3x256xf32>
    tpu.vector_store %arg9[%c0_23, %c0_24, %c0_25, %c0_26], %33 {strides = array<i32>} : memref<1x1x3x256xf32, #tpu.memory_space<vmem>>, vector<1x1x3x256xf32>,
    %cst_27 = arith.constant dense<0.000000e+00> : vector<3x256xf32>
    %34 = tpu.matmul %24, %22, %cst_27 {dimension_numbers = #tpu.dot_dimension_numbers<[1], [0], [0], [1], [0, 0, 1, 1], [], []>} : vector<3x64xf32>, vector<64x256xf32>, vector<3x256xf32> -> vector<3x256xf32>
    %35 = arith.addf %34, %28 : vector<3x256xf32>
    %c0_28 = arith.constant 0 : index
    %c0_29 = arith.constant 0 : index
    %c0_30 = arith.constant 0 : index
    %c0_31 = arith.constant 0 : index
    %36 = vector.load %arg10[%c0_28, %c0_29, %c0_30, %c0_31] : memref<1x1x3x256xf32, #tpu.memory_space<vmem>>, vector<1x1x3x256xf32>
    %37 = vector.shape_cast %36 : vector<1x1x3x256xf32> to vector<3x256xf32>
    %38 = vector.shape_cast %35 : vector<3x256xf32> to vector<1x1x3x256xf32>
    tpu.vector_store %arg10[%c0_28, %c0_29, %c0_30, %c0_31], %38 {strides = array<i32>} : memref<1x1x3x256xf32, #tpu.memory_space<vmem>>, vector<1x1x3x256xf32>,
    return
  }
  func.func @transform_0(%arg0: i32, %arg1: i32, %arg2: i32) -> (i32, i32, i32, i32) {
    %c0_i32 = arith.constant 0 : i32
    %c0_i32_0 = arith.constant 0 : i32
    return %arg0, %arg1, %c0_i32, %arg2 : i32, i32, i32, i32
  }
  func.func @transform_1(%arg0: i32, %arg1: i32, %arg2: i32) -> (i32, i32, i32) {
    %c0_i32 = arith.constant 0 : i32
    %c0_i32_0 = arith.constant 0 : i32
    %c0_i32_1 = arith.constant 0 : i32
    return %arg0, %c0_i32, %c0_i32_0 : i32, i32, i32
  }
  func.func @transform_2(%arg0: i32, %arg1: i32, %arg2: i32) -> (i32, i32, i32) {
    %c0_i32 = arith.constant 0 : i32
    %c0_i32_0 = arith.constant 0 : i32
    %c0_i32_1 = arith.constant 0 : i32
    return %arg0, %c0_i32, %c0_i32_0 : i32, i32, i32
  }
  func.func @transform_3(%arg0: i32, %arg1: i32, %arg2: i32) -> (i32, i32, i32) {
    %c0_i32 = arith.constant 0 : i32
    %c0_i32_0 = arith.constant 0 : i32
    %c0_i32_1 = arith.constant 0 : i32
    return %arg0, %c0_i32, %c0_i32_0 : i32, i32, i32
  }
  func.func @transform_4(%arg0: i32, %arg1: i32, %arg2: i32) -> (i32, i32, i32) {
    %c0_i32 = arith.constant 0 : i32
    %c0_i32_0 = arith.constant 0 : i32
    %c0_i32_1 = arith.constant 0 : i32
    return %arg0, %c0_i32, %c0_i32_0 : i32, i32, i32
  }
  func.func @transform_5(%arg0: i32, %arg1: i32, %arg2: i32) -> (i32, i32, i32) {
    %c0_i32 = arith.constant 0 : i32
    %c0_i32_0 = arith.constant 0 : i32
    %c0_i32_1 = arith.constant 0 : i32
    return %arg0, %c0_i32, %c0_i32_0 : i32, i32, i32
  }
  func.func @transform_6(%arg0: i32, %arg1: i32, %arg2: i32) -> (i32, i32, i32, i32) {
    %c0_i32 = arith.constant 0 : i32
    %c0_i32_0 = arith.constant 0 : i32
    return %arg0, %arg1, %c0_i32, %arg2 : i32, i32, i32, i32
  }
  func.func @transform_7(%arg0: i32, %arg1: i32, %arg2: i32) -> (i32, i32, i32, i32) {
    %c0_i32 = arith.constant 0 : i32
    %c0_i32_0 = arith.constant 0 : i32
    return %arg0, %arg1, %c0_i32, %arg2 : i32, i32, i32, i32
  }
}

</mosaic_0001>

<bundles_post_ra>
// kernel: renderer_forward.1
= control target key start
LH: loop header
LB: loop body
LE: loop exit
PB: predicated region body
PF: predicated region fallthrough
CT: control target
= control target key end

     0   :  { %s1409_s24 = smov 0   ;;  %s1411_s25 = smov 0   ;;  %s1663_s0 = inlined_call_operand.vmem [shape: f32[3,2,3,256], index: 0, kind: input, shape index: {}]   ;;  %s1664_s1 = inlined_call_operand.vmem [shape: f32[3,64,3], index: 1, kind: input, shape index: {}]   ;;  %s1665_s2 = inlined_call_operand.vmem [shape: f32[3,64,1], index: 2, kind: input, shape index: {}]   ;;  %s1666_s3 = inlined_call_operand.vmem [shape: f32[3,64,1], index: 3, kind: input, shape index: {}]   ;;  %s1667_s4 = inlined_call_operand.vmem [shape: f32[3,3,64], index: 4, kind: input, shape index: {}]   ;;  %s1668_s5 = inlined_call_operand.vmem [shape: f32[3,3,1], index: 5, kind: input, shape index: {}]   ;;  %s1669_s6 = inlined_call_operand.vmem [shape: f32[3,2,3,256], index: 6, kind: output, shape index: {0}]   ;;  %s1670_s7 = inlined_call_operand.vmem [shape: f32[3,2,3,256], index: 7, kind: output, shape index: {1}]  }
   0x1   :  { %s1413_s26 = smov 0   ;;  %s1415_s27 = smov 0  }
   0x2   :  { %s1417_s28 = smov 0  }
   0x3 LB: > { %s33_s29 = sadd.s32 1, %s1357_s26  ;;  %s37_s30 = sadd.s32 1, %s1361_s27  ;;  %s1365_s28 = sphi %s1417_s28, %s18_s28   ;;  %s1361_s27 = sphi %s1415_s27, %s1674_s27   ;;  %s1357_s26 = sphi %s1413_s26, %s1673_s26   ;;  %s1353_s25 = sphi %s1411_s25, %s1672_s25   ;;  %s1349_s24 = sphi %s1409_s24, %s1671_s24  }
   0x4   : > { %p35_p0 = scmp.ge.s32.totalorder %s33_s29, 2  ;;  %p1247_p1 = scmp.ge.s32.totalorder %s1365_s28, 1 }
   0x5   : > { %p328_p2 = scmp.lt.s32.totalorder %s1365_s28, 7 }
   0x6   : > { %s1676_s29 = smov (%p35_p0, %s33_s29), 0  ;;  %s1678_s30 = smov (!%p35_p0, %s37_s30), %s1361_s27 }
   0x7   : > { %p329_p3 = pnand %p1247_p1, %p328_p2  ;;  %p39_p4 = scmp.ge.s32.totalorder %s1678_s30, 3 }
   0x8   : > { %p413_p5 = scmp.lt.s32.totalorder (!%p329_p3), %s1353_s25, 2  ;;  %p415_p6 = scmp.lt.s32.totalorder (!%p329_p3), %s1349_s24, 1 }
   0x9   : > { %s1680_s30 = smov (%p39_p4, %s1678_s30), 0  ;;  %332 = sbr.rel (%p329_p3) target bundleno = 484 (0x1e4), region = 44 }
   0xe   : > { %v1367_v0 = vmov 0.0   ;;  %v1368_v1 = vmov 0   ;;  %s1682_s25 = smov (!%p413_p5, %s1353_s25), 2  ;;  %s1684_s24 = smov (!%p415_p6, %s1349_s24), 1  ;;  %vm561_vm0 = vcmask 1042432   ;;  %vm536_vm1 = vcmask 23552  }
   0xf   : > { %630 = vmatprep.mubr.f32.mxu0 %v1367_v0  ;;  %1325 = vset.pattern.permute.xlu1 %v1368_v1  ;;  %s1441_s8 = sshll.u32 %s1682_s25, 2  ;;  %s1248_s9 = sshll.u32 %s1684_s24, 1  ;;  %vm846_vm12 = vcmask 523264  }
  0x10   : > { %1324 = vset.pattern.permute.xlu0 %v1368_v1  ;;  %914 = vmatprep.mubr.f32.mxu1 %v1367_v0  ;;  %s1443_s10 = sshll.u32 %s1682_s25, 6  ;;  %s422_s11 = sadd.s32 %s1441_s8, %s1248_s9 }
  0x11   : > { %s1450_s14 = scalar_lea.vmem %s1665_s2, %s1443_s10  ;;  %s1452_s15 = sshll.u32 %s422_s11, 2 }
  0x12   : > { %s424_s18 = scalar_lea.vmem %s1663_s0, %s1452_s15  ;;  %s1462_s21 = scalar_lea.vmem %s1664_s1, %s1443_s10  ;;  %v491_v2 = vld [vmem:[%s1450_s14 + $0x28] sm:$0xff]  ;;  %v493_v4 = vld [vmem:[%s1450_s14 + $0x38] sm:$0xff]  ;;  %v490_v6 = vld [vmem:[%s1450_s14 + $0x20] sm:$0xff] }
  0x13   : > { %v477_v3 = vld [vmem:[%s424_s18] sm:$0x77]  ;;  %521 = vperm.xlu1 %1325, %v491_v2   ;;  %531 = vperm.xlu0 %1324, %v493_v4   ;;  %v492_v8 = vld [vmem:[%s1450_s14 + $0x30] sm:$0xff]  ;;  %v479_v10 = vld [vmem:[%s1462_s21 + $0x8] sm:$0xff]  ;;  %s1480_s24 = scalar_lea.vmem %s1666_s3, %s1443_s10  ;;  %s448_s10 = scalar_lea.vmem %s1668_s5, %s1441_s8 }
  0x14   : > { %v535_v5 = vcombine.high %v477_v3, %v477_v3  ;;  %v478_v7 = vld [vmem:[%s1462_s21] sm:$0xff]  ;;  %v488_v9 = vld [vmem:[%s1450_s14 + $0x10] sm:$0xff]  ;;  %v489_v11 = vld [vmem:[%s1450_s14 + $0x18] sm:$0xff]  ;;  %s444_s13 = scalar_lea.vmem %s1667_s4, %s1441_s8  ;;  %s461_s16 = scalar_lea.vmem %s1669_s6, %s1452_s15 }
  0x15   : > { %v486_v12 = vld [vmem:[%s1450_s14] sm:$0xff]  ;;  %v480_v13 = vld [vmem:[%s1462_s21 + $0x10] sm:$0xff]  ;;  %v487_v14 = vld [vmem:[%s1450_s14 + $0x8] sm:$0xff]  ;;  %s475_s19 = scalar_lea.vmem %s1670_s7, %s1452_s15 }
  0x16   : > { %1265 = vmatprep.subr.msk.mxu0 %vm561_vm0, %v535_v5  ;;  %v685_v15 = vld [vmem:[%s1480_s24 + $0x30] sm:$0xff]  ;;  %v481_v16 = vld [vmem:[%s1462_s21 + $0x18] sm:$0xff]  ;;  %v683_v18 = vld [vmem:[%s1480_s24 + $0x20] sm:$0xff] }
  0x17   : > { %1266 = vmatpush1.msk.msra.mxu0 %vm561_vm0, %v477_v3  ;;  %516 = vperm.xlu1 %1325, %v490_v6   ;;  %v686_v17 = vld [vmem:[%s1480_s24 + $0x38] sm:$0xff]  ;;  %v482_v19 = vld [vmem:[%s1462_s21 + $0x20] sm:$0xff]  ;;  %v684_v20 = vld [vmem:[%s1480_s24 + $0x28] sm:$0xff] }
  0x18   : > { %1267 = vmatmul.mubr.msk.f32.vlgmr.msra.gmra.mxu0 %vm536_vm1, %v478_v7  ;;  %526 = vperm.xlu0 %1324, %v492_v8   ;;  %v681_v21 = vld [vmem:[%s1480_s24 + $0x10] sm:$0xff]  ;;  %v483_v22 = vld [vmem:[%s1462_s21 + $0x28] sm:$0xff]  ;;  %v682_v23 = vld [vmem:[%s1480_s24 + $0x18] sm:$0xff] }
  0x19   : > { %636 = vmatprep.mubr.f32.mxu0 %v1367_v0  ;;  %v679_v24 = vld [vmem:[%s1480_s24] sm:$0xff]  ;;  %v484_v25 = vld [vmem:[%s1462_s21 + $0x30] sm:$0xff]  ;;  %v680_v26 = vld [vmem:[%s1480_s24 + $0x8] sm:$0xff] }
  0x1a   : > { %v485_v27 = vld [vmem:[%s1462_s21 + $0x38] sm:$0xff]  ;;  %v840_v28 = vld [vmem:[%s448_s10] sm:$0x7] }
  0x1b   : > { %506 = vperm.xlu1 %1325, %v488_v9  }
  0x1c   : > { %1268 = vmatmul.mubr.msk.f32.gmra.mxu0 %vm536_vm1, %v479_v10  ;;  %511 = vperm.xlu0 %1324, %v489_v11  }
  0x1d   : > { %642 = vmatprep.mubr.f32.mxu0 %v1367_v0 }
  0x1f   : > { %496 = vperm.xlu1 %1325, %v486_v12  }
  0x20   : > { %1269 = vmatmul.mubr.msk.f32.gmra.mxu0 %vm536_vm1, %v480_v13  ;;  %501 = vperm.xlu0 %1324, %v487_v14  }
  0x21   : > { %648 = vmatprep.mubr.f32.mxu0 %v1367_v0 }
  0x23   : > { %719 = vperm.xlu1 %1325, %v685_v15  }
  0x24   : > { %1270 = vmatmul.mubr.msk.f32.gmra.mxu0 %vm536_vm1, %v481_v16  ;;  %724 = vperm.xlu0 %1324, %v686_v17  }
  0x25   : > { %654 = vmatprep.mubr.f32.mxu0 %v1367_v0 }
  0x27   : > { %709 = vperm.xlu1 %1325, %v683_v18  }
  0x28   : > { %1271 = vmatmul.mubr.msk.f32.gmra.mxu0 %vm536_vm1, %v482_v19  ;;  %714 = vperm.xlu0 %1324, %v684_v20  }
  0x29   : > { %660 = vmatprep.mubr.f32.mxu0 %v1367_v0 }
  0x2b   : > { %699 = vperm.xlu1 %1325, %v681_v21  }
  0x2c   : > { %1272 = vmatmul.mubr.msk.f32.gmra.mxu0 %vm536_vm1, %v483_v22  ;;  %704 = vperm.xlu0 %1324, %v682_v23  }
  0x2d   : > { %666 = vmatprep.mubr.f32.mxu0 %v1367_v0 }
  0x2f   : > { %689 = vperm.xlu1 %1325, %v679_v24  }
  0x30   : > { %1273 = vmatmul.mubr.msk.f32.gmra.mxu0 %vm536_vm1, %v484_v25  ;;  %694 = vperm.xlu0 %1324, %v680_v26  }
  0x31   : > { %672 = vmatprep.mubr.f32.mxu0 %v1367_v0 }
  0x34   : > { %1274 = vmatmul.mubr.msk.f32.gmra.mxu0 %vm536_vm1, %v485_v27  ;;  %843 = vperm.xlu0 %1324, %v840_v28  }
  0x8e   : > { %v532_v35 = vpop.permute.xlu0 %531  ;;  %v522_v37 = vpop.permute.xlu1 %521 }
  0x92   : > { %v517_v42 = vpop.permute.xlu1 %516 }
  0x93   : > { %v527_v40 = vpop.permute.xlu0 %526 }
  0x96   : > { %v507_v47 = vpop.permute.xlu1 %506 }
  0x97   : > { %v512_v45 = vpop.permute.xlu0 %511 }
  0x9a   : > { %v497_v55 = vpop.permute.xlu1 %496 }
  0x9b   : > { %v502_v50 = vpop.permute.xlu0 %501 }
  0x9e   : > { %v720_v9 = vpop.permute.xlu1 %719 }
  0x9f   : > { %v725_v2 = vpop.permute.xlu0 %724 }
  0xa3   : > { %v715_v22 = vpop.permute.xlu0 %714 }
  0xd8   : > { %v1513_v29 = vpop.f32.mrf.mxu0 }
  0xd9   : > { %v1575_v26 = vadd.f32 %v1513_v29, %v497_v55 }
  0xda   : > { %v1515_v30 = vpop.f32.mrf.mxu0 }
  0xdb   : > { %v1569_v23 = vadd.f32 %v1515_v30, %v497_v55  ;;  %v710_v30 = vpop.permute.xlu1 %709 }
  0xdc   : > { %v1517_v31 = vpop.f32.mrf.mxu0 }
  0xdd   : > { %v1563_v19 = vadd.f32 %v1517_v31, %v502_v50  ;;  %vm744_vm1 = vcmp.ge.f32.partialorder %v1569_v23, 0.0 }
  0xde   : > { %v640_v32 = vpop.f32.mrf.mxu0 }
  0xdf   : > { %v1557_v16 = vadd.f32 %v640_v32, %v502_v50  ;;  %vm745_vm0 = vcmp.ge.f32.partialorder %v1563_v19, 0.0 }
  0xe0   : > { %v644_v33 = vpop.f32.mrf.mxu0 }
  0xe1   : > { %v1552_v13 = vadd.f32 %v644_v33, %v507_v47  ;;  %v762_v29 = vmul.f32 0.01, %v1557_v16  ;;  %vm746_vm15 = vcmp.ge.f32.partialorder %v1557_v16, 0.0 }
  0xe2   : > { %v646_v34 = vpop.f32.mrf.mxu0 }
  0xe3   : > { %v1547_v10 = vadd.f32 %v646_v34, %v507_v47  ;;  %v763_v28 = vmul.f32 0.01, %v1552_v13  ;;  %vm747_vm14 = vcmp.ge.f32.partialorder %v1552_v13, 0.0  ;;  %v761_v34 = vmul.f32 0.01, %v1563_v19 }
  0xe4   : > { %v650_v36 = vpop.f32.mrf.mxu0 }
  0xe5   : > { %v1542_v6 = vadd.f32 %v650_v36, %v512_v45  ;;  %v764_v25 = vmul.f32 0.01, %v1547_v10  ;;  %vm748_vm13 = vcmp.ge.f32.partialorder %v1547_v10, 0.0 }
  0xe6   : > { %v652_v38 = vpop.f32.mrf.mxu0 }
  0xe7   : > { %v1538_v3 = vadd.f32 %v652_v38, %v512_v45  ;;  %v765_v21 = vmul.f32 0.01, %v1542_v6  ;;  %vm749_vm11 = vcmp.ge.f32.partialorder %v1542_v6, 0.0  ;;  %v780_v36 = vsel %vm748_vm13, %v1547_v10, %v764_v25 }
  0xe8   : > { %v656_v39 = vpop.f32.mrf.mxu0 }
  0xe9   : > { %v1534_v63 = vadd.f32 %v656_v39, %v517_v42  ;;  %v766_v18 = vmul.f32 0.01, %v1538_v3  ;;  %vm750_vm10 = vcmp.ge.f32.partialorder %v1538_v3, 0.0  ;;  %v781_v33 = vsel %vm749_vm11, %v1542_v6, %v765_v21 }
  0xea   : > { %v658_v41 = vpop.f32.mrf.mxu0  ;;  %v779_v39 = vsel %vm747_vm14, %v1552_v13, %v763_v28 }
  0xeb   : > { %v1527_v58 = vadd.f32 %v658_v41, %v517_v42  ;;  %v767_v15 = vmul.f32 0.01, %v1534_v63  ;;  %vm751_vm9 = vcmp.ge.f32.partialorder %v1534_v63, 0.0  ;;  %v782_v31 = vsel %vm750_vm10, %v1538_v3, %v766_v18  ;;  %v705_v42 = vpop.permute.xlu0 %704 }
  0xec   : > { %v662_v43 = vpop.f32.mrf.mxu0 }
  0xed   : > { %v1529_v59 = vadd.f32 %v662_v43, %v522_v37  ;;  %v768_v12 = vmul.f32 0.01, %v1527_v58  ;;  %vm752_vm8 = vcmp.ge.f32.partialorder %v1527_v58, 0.0  ;;  %v783_v27 = vsel %vm751_vm9, %v1534_v63, %v767_v15 }
  0xee   : > { %v664_v44 = vpop.f32.mrf.mxu0  ;;  %v778_v43 = vsel %vm746_vm15, %v1557_v16, %v762_v29 }
  0xef   : > { %v1525_v56 = vadd.f32 %v664_v44, %v522_v37  ;;  %v769_v8 = vmul.f32 0.01, %v1529_v59  ;;  %vm753_vm7 = vcmp.ge.f32.partialorder %v1529_v59, 0.0  ;;  %v784_v24 = vsel %vm752_vm8, %v1527_v58, %v768_v12 }
  0xf0   : > { %v668_v46 = vpop.f32.mrf.mxu0  ;;  %v760_v37 = vmul.f32 0.01, %v1569_v23 }
  0xf1   : > { %v1523_v53 = vadd.f32 %v668_v46, %v527_v40  ;;  %v770_v5 = vmul.f32 0.01, %v1525_v56  ;;  %vm754_vm6 = vcmp.ge.f32.partialorder %v1525_v56, 0.0  ;;  %v785_v20 = vsel %vm753_vm7, %v1529_v59, %v769_v8 }
  0xf2   : > { %v670_v48 = vpop.f32.mrf.mxu0  ;;  %v738_v45 = vadd.f32 %v715_v22, %v1525_v56  ;;  %v777_v46 = vsel %vm745_vm0, %v1563_v19, %v761_v34  ;;  %v776_v50 = vsel %vm744_vm1, %v1569_v23, %v760_v37 }
  0xf3   : > { %v1519_v51 = vadd.f32 %v670_v48, %v527_v40  ;;  %v771_v1 = vmul.f32 0.01, %v1523_v53  ;;  %vm755_vm5 = vcmp.ge.f32.partialorder %v1523_v53, 0.0  ;;  %v786_v17 = vsel %vm754_vm6, %v1525_v56, %v770_v5 }
  0xf4   : > { %v674_v49 = vpop.f32.mrf.mxu0  ;;  %v759_v40 = vmul.f32 0.01, %v1575_v26  ;;  %v739_v41 = vadd.f32 %v720_v9, %v1523_v53  ;;  %v737_v48 = vadd.f32 %v715_v22, %v1529_v59  ;;  %v735_v56 = vadd.f32 %v710_v30, %v1534_v63 }
  0xf5   : > { %v1521_v52 = vadd.f32 %v674_v49, %v532_v35  ;;  %v772_v62 = vmul.f32 0.01, %v1519_v51  ;;  %vm756_vm4 = vcmp.ge.f32.partialorder %v1519_v51, 0.0  ;;  %v787_v14 = vsel %vm755_vm5, %v1523_v53, %v771_v1  ;;  %v700_v49 = vpop.permute.xlu1 %699  ;;  %v695_v1 = vpop.permute.xlu0 %694 }
  0xf6   : > { %v676_v54 = vpop.f32.mrf.mxu0  ;;  %v740_v38 = vadd.f32 %v720_v9, %v1519_v51  ;;  %v736_v53 = vadd.f32 %v710_v30, %v1527_v58  ;;  %v819_v55 = vmul.f32 0.01, %v739_v41  ;;  %vm803_vm6 = vcmp.ge.f32.partialorder %v739_v41, 0.0 }
  0xf7   : > { %v677_v57 = vadd.f32 %v676_v54, %v532_v35  ;;  %v773_v60 = vmul.f32 0.01, %v1521_v52  ;;  %vm757_vm3 = vcmp.ge.f32.partialorder %v1521_v52, 0.0  ;;  %v788_v11 = vsel %vm756_vm4, %v1519_v51, %v772_v62  ;;  %v1615_v51 = vld [vmem:[%s444_s13] sm:$0x7] }
  0xf8   : > { %v741_v35 = vadd.f32 %v725_v2, %v1521_v52  ;;  %vm804_vm5 = vcmp.ge.f32.partialorder %v740_v38, 0.0  ;;  %v818_v59 = vmul.f32 0.01, %v738_v45  ;;  %vm802_vm7 = vcmp.ge.f32.partialorder %v738_v45, 0.0 }
  0xf9   : > { %vm758_vm2 = vcmp.ge.f32.partialorder %v677_v57, 0.0  ;;  %v774_v61 = vmul.f32 0.01, %v677_v57  ;;  %v789_v7 = vsel %vm757_vm3, %v1521_v52, %v773_v60  ;;  %v742_v32 = vadd.f32 %v725_v2, %v677_v57  ;;  %v690_v8 = vpop.permute.xlu1 %689 }
  0xfa   : > { %v821_v47 = vmul.f32 0.01, %v741_v35  ;;  %vm805_vm4 = vcmp.ge.f32.partialorder %v741_v35, 0.0  ;;  %v820_v52 = vmul.f32 0.01, %v740_v38  ;;  %v734_v60 = vadd.f32 %v705_v42, %v1538_v3 }
  0xfb   : > { %v790_v4 = vsel %vm758_vm2, %v677_v57, %v774_v61  ;;  %vm743_vm2 = vcmp.ge.f32.partialorder %v1575_v26, 0.0  ;;  %v822_v44 = vmul.f32 0.01, %v742_v32  ;;  %vm806_vm3 = vcmp.ge.f32.partialorder %v742_v32, 0.0 }
  0xfc   : > { %866 = vmatprep.subr.mxu1 %v790_v4  ;;  %v775_v54 = vsel %vm743_vm2, %v1575_v26, %v759_v40  ;;  %v837_v58 = vsel %vm805_vm4, %v741_v35, %v821_v47  ;;  %v817_v61 = vmul.f32 0.01, %v737_v48  ;;  %v733_v62 = vadd.f32 %v705_v42, %v1542_v6 }
  0xfd   : > { %867 = vmatpush1.msra.mxu1 %v789_v7  ;;  %v838_v57 = vsel %vm806_vm3, %v742_v32, %v822_v44  ;;  %v836_v63 = vsel %vm804_vm5, %v740_v38, %v820_v52  ;;  %vm801_vm8 = vcmp.ge.f32.partialorder %v737_v48, 0.0  ;;  %v816_v2 = vmul.f32 0.01, %v736_v53  ;;  %v844_v32 = vpop.permute.xlu0 %843 }
  0xfe   : > { %868 = vmatprep.subr.mxu1 %v788_v11  ;;  %v732_v4 = vadd.f32 %v700_v49, %v1547_v10  ;;  %v835_v3 = vsel %vm803_vm6, %v739_v41, %v819_v55  ;;  %vm800_vm9 = vcmp.ge.f32.partialorder %v736_v53, 0.0  ;;  %v815_v5 = vmul.f32 0.01, %v735_v56 }
  0xff   : > { %869 = vmatpush1.msra.mxu1 %v787_v14  ;;  %v731_v7 = vadd.f32 %v700_v49, %v1552_v13  ;;  %v834_v6 = vsel %vm802_vm7, %v738_v45, %v818_v59  ;;  %vm799_vm10 = vcmp.ge.f32.partialorder %v735_v56, 0.0  ;;  %v814_v9 = vmul.f32 0.01, %v734_v60 }
 0x100   : > { %870 = vmatprep.subr.mxu1 %v786_v17  ;;  %v730_v11 = vadd.f32 %v695_v1, %v1557_v16  ;;  %v729_v12 = vadd.f32 %v695_v1, %v1563_v19  ;;  %vm798_vm11 = vcmp.ge.f32.partialorder %v734_v60, 0.0  ;;  %v813_v10 = vmul.f32 0.01, %v733_v62 }
 0x101   : > { %871 = vmatpush1.msra.mxu1 %v785_v20  ;;  %v832_v14 = vsel %vm800_vm9, %v736_v53, %v816_v2  ;;  %vm797_vm13 = vcmp.ge.f32.partialorder %v733_v62, 0.0  ;;  %v812_v15 = vmul.f32 0.01, %v732_v4  ;;  %v728_v13 = vadd.f32 %v690_v8, %v1569_v23 }
 0x102   : > { %872 = vmatprep.subr.mxu1 %v784_v24  ;;  %v727_v17 = vadd.f32 %v690_v8, %v1575_v26  ;;  %v831_v18 = vsel %vm799_vm10, %v735_v56, %v815_v5  ;;  %vm796_vm14 = vcmp.ge.f32.partialorder %v732_v4, 0.0  ;;  %v811_v20 = vmul.f32 0.01, %v731_v7 }
 0x103   : > { %873 = vmatpush1.msra.mxu1 %v783_v27  ;;  %v830_v16 = vsel %vm798_vm11, %v734_v60, %v814_v9  ;;  %vm795_vm15 = vcmp.ge.f32.partialorder %v731_v7, 0.0  ;;  %v810_v19 = vmul.f32 0.01, %v730_v11  ;;  %v809_v21 = vmul.f32 0.01, %v729_v12 }
 0x104   : > { %874 = vmatprep.subr.mxu1 %v782_v31  ;;  %v829_v22 = vsel %vm797_vm13, %v733_v62, %v813_v10  ;;  %vm794_vm0 = vcmp.ge.f32.partialorder %v730_v11, 0.0  ;;  %v828_v24 = vsel %vm796_vm14, %v732_v4, %v812_v15  ;;  %vm793_vm1 = vcmp.ge.f32.partialorder %v729_v12, 0.0 }
 0x105   : > { %875 = vmatpush1.msra.mxu1 %v781_v33  ;;  %v808_v25 = vmul.f32 0.01, %v728_v13  ;;  %v807_v27 = vmul.f32 0.01, %v727_v17  ;;  %v827_v23 = vsel %vm795_vm15, %v731_v7, %v811_v20  ;;  %vm792_vm2 = vcmp.ge.f32.partialorder %v728_v13, 0.0 }
 0x106   : > { %876 = vmatprep.subr.mxu1 %v780_v36  ;;  %vm791_vm3 = vcmp.ge.f32.partialorder %v727_v17, 0.0  ;;  %v826_v26 = vsel %vm794_vm0, %v730_v11, %v810_v19  ;;  %v825_v28 = vsel %vm793_vm1, %v729_v12, %v809_v21 }
 0x107   : > { %877 = vmatpush1.msra.mxu1 %v779_v39  ;;  %v824_v30 = vsel %vm792_vm2, %v728_v13, %v808_v25  ;;  %v823_v31 = vsel %vm791_vm3, %v727_v17, %v807_v27 }
 0x108   : > { %878 = vmatprep.subr.mxu1 %v778_v43 }
 0x109   : > { %879 = vmatpush1.msra.mxu1 %v777_v46 }
 0x10a   : > { %880 = vmatprep.subr.mxu1 %v776_v50 }
 0x10b   : > { %881 = vmatpush1.msra.mxu1 %v775_v54 }
 0x10c   : > { %1275 = vmatmul.mubr.msk.f32.vlgmr.msra.gmra.mxu1 %vm846_vm12, %v1615_v51  ;;  %942 = vmatprep.subr.mxu1 %v838_v57 }
 0x10d   : > { %943 = vmatpush1.msra.mxu1 %v837_v58  ;;  %990 = vmatprep.mubr.f32.mxu1 %v1367_v0  ;;  %v833_v0 = vsel %vm801_vm8, %v737_v48, %v817_v61 }
 0x10e   : > { %944 = vmatprep.subr.mxu1 %v836_v63 }
 0x10f   : > { %945 = vmatpush1.msra.mxu1 %v835_v3 }
 0x110   : > { %946 = vmatprep.subr.mxu1 %v834_v6 }
 0x111   : > { %947 = vmatpush1.msra.mxu1 %v833_v0 }
 0x112   : > { %948 = vmatprep.subr.mxu1 %v832_v14 }
 0x113   : > { %949 = vmatpush1.msra.mxu1 %v831_v18 }
 0x114   : > { %950 = vmatprep.subr.mxu1 %v830_v16 }
 0x115   : > { %951 = vmatpush1.msra.mxu1 %v829_v22 }
 0x116   : > { %952 = vmatprep.subr.mxu1 %v828_v24 }
 0x117   : > { %953 = vmatpush1.msra.mxu1 %v827_v23 }
 0x118   : > { %954 = vmatprep.subr.mxu1 %v826_v26 }
 0x119   : > { %955 = vmatpush1.msra.mxu1 %v825_v28 }
 0x11a   : > { %956 = vmatprep.subr.mxu1 %v824_v30 }
 0x11b   : > { %957 = vmatpush1.msra.mxu1 %v823_v31 }
 0x11c   : > { %1276 = vmatmul.mubr.msk.f32.vlgmr.msra.gmra.mxu1 %vm846_vm12, %v1615_v51 }
 0x1cc   : > { %v916_v29 = vpop.f32.mrf.mxu1 }
 0x1cd   : > { %v917_v34 = vadd.f32 %v916_v29, %v844_v32 }
 0x1ce   : > { %v918_v33 = vpop.f32.mrf.mxu1 }
 0x1cf   : > { %v919_v35 = vadd.f32 %v918_v33, %v844_v32 }
 0x1d1   : > { %v923_v36 = vcombine.low %v917_v34, %v919_v35 }
 0x1d3   : > { %925 = vst [vmem:[%s461_s16] sm:$0x77] %v923_v36 }
 0x1dc   : > { %v992_v37 = vpop.f32.mrf.mxu1 }
 0x1dd   : > { %v993_v39 = vadd.f32 %v992_v37, %v844_v32 }
 0x1de   : > { %v994_v38 = vpop.f32.mrf.mxu1 }
 0x1df   : > { %v995_v40 = vadd.f32 %v994_v38, %v844_v32 }
 0x1e1   : > { %v999_v41 = vcombine.low %v993_v39, %v995_v40 }
 0x1e3   : > { %1001 = vst [vmem:[%s475_s19] sm:$0x77] %v999_v41 }
 0x1e4 PF: > { %s18_s28 = sadd.s32 1, %s1365_s28   ;;  %s1671_s24 = smov %s1357_s26 }
 0x1e5   : > { %p15_p7 = scmp.ge.s32.totalorder %s18_s28, 8   ;;  %s1672_s25 = smov %s1361_s27 }
 0x1e6   : > { %s1673_s26 = smov %s1676_s29  ;;  %s1674_s27 = smov %s1680_s30 }
 0x1e7   :  { %17 = sbr.rel (!%p15_p7) target bundleno = 3 (0x3), region = 101 }

</bundles_post_ra>
